<compile_context>
chip_gen: v5e
topology: v5e:2x2
jax: 0.10.0
libtpu: 0.0.40
codegen_flags: <defaults>
</compile_context>

<pallas_src>
import math
import functools

import jax
import jax.numpy as jnp
from jax.experimental import pallas as pl
from jax.experimental.pallas import tpu as pltpu

EPS = 1e-12  # matches torch.nn.functional.normalize default eps


def _arc_kernel(x_ref, y_ref, o_ref, *, tile_hw, hw):
    ti = pl.program_id(1)

    # Output block is resident across the ti (reduction) axis: init once.
    @pl.when(ti == 0)
    def _():
        o_ref[...] = jnp.zeros_like(o_ref)

    x = x_ref[...].astype(jnp.float32)  # (1, C, tile_hw)
    y = y_ref[...].astype(jnp.float32)  # (1, C, tile_hw)

    xy = jnp.sum(x * y, axis=1, keepdims=True)  # (1, 1, tile_hw)
    xx = jnp.sum(x * x, axis=1, keepdims=True)
    yy = jnp.sum(y * y, axis=1, keepdims=True)

    # F.normalize clamps each norm at eps: max(sqrt(s), eps) == sqrt(max(s, eps^2)).
    inv_norm = (jax.lax.rsqrt(jnp.maximum(xx, EPS * EPS)) *
                jax.lax.rsqrt(jnp.maximum(yy, EPS * EPS)))
    cos = xy * inv_norm

    # Mask columns past hw (the last spatial tile may overrun the array).
    col = ti * tile_hw + jax.lax.broadcasted_iota(jnp.int32, (1, 1, tile_hw), 2)
    contrib = jnp.where(col < hw, 1.0 - cos, 0.0)

    o_ref[...] += contrib


def arc_margin_forward(inp, label, *, target_block_bytes=2 << 20):
    """inp, label: (b, c, h, w) arrays. Returns scalar f32 = mean(1 - cos)."""
    b, c, h, w = inp.shape
    assert label.shape == inp.shape
    hw = h * w
    n = b * hw

    # Free reshapes: contiguous NCHW -> (b, c, h*w). No transpose/pad/cast.
    x = inp.reshape(b, c, hw)
    y = label.reshape(b, c, hw)

    # ~2 MiB per input block (fits default scoped VMEM with double-buffering
    # on v5e/v6e/v7x); spatial tile is a multiple of 128 lanes, or the whole
    # spatial extent if that is smaller.
    itemsize = max(jnp.dtype(inp.dtype).itemsize, jnp.dtype(label.dtype).itemsize)
    tile_cols = max(128, (target_block_bytes // (c * itemsize)) // 128 * 128)
    tile_hw = hw if hw <= tile_cols else tile_cols
    num_tiles = pl.cdiv(hw, tile_hw)

    kernel = functools.partial(_arc_kernel, tile_hw=tile_hw, hw=hw)

    partial = pl.pallas_call(
        kernel,
        out_shape=jax.ShapeDtypeStruct((b, 1, tile_hw), jnp.float32),
        grid_spec=pltpu.PrefetchScalarGridSpec(
            num_scalar_prefetch=0,
            grid=(b, num_tiles),
            in_specs=[
                pl.BlockSpec((1, c, tile_hw), lambda bi, ti: (bi, 0, ti)),
                pl.BlockSpec((1, c, tile_hw), lambda bi, ti: (bi, 0, ti)),
            ],
            out_specs=pl.BlockSpec((1, 1, tile_hw), lambda bi, ti: (bi, 0, 0)),
        ),
        compiler_params=pltpu.CompilerParams(
            dimension_semantics=("parallel", "arbitrary")),
    )(x, y)

    # Tiny final cross-lane reduction + mean outside the kernel.
    return jnp.sum(partial) / jnp.float32(n)


class ArcMarginProduct:
    """JAX/Pallas port of the PyTorch ArcMarginProduct forward."""

    def __init__(self, in_features=3, out_features=3, s=30.0, m=0.5,
                 easy_margin=False, key=None):
        self.in_features = in_features
        self.out_features = out_features
        self.s = s
        self.m = m
        self.easy_margin = easy_margin
        self.cos_m = math.cos(m)
        self.sin_m = math.sin(m)
        self.th = math.cos(math.pi - m)
        self.mm = math.sin(math.pi - m) * m
        # Deterministic xavier-uniform init of the (unused-in-forward) weight.
        if key is None:
            key = jax.random.PRNGKey(0)
        limit = math.sqrt(6.0 / (in_features + out_features))
        self.weight = jax.random.uniform(
            key, (out_features, in_features), dtype=jnp.float32,
            minval=-limit, maxval=limit)
        # TODO(synk): self.weight / s / m / easy_margin are never used in the
        # reference forward pass, so they do not participate in the kernel.

    def __call__(self, inp, label):
        return arc_margin_forward(inp, label)


def _reference(inp, label):
    b, c, h, w = inp.shape
    x = jnp.transpose(inp.reshape(b, c, h * w), (0, 2, 1))
    y = jnp.transpose(label.reshape(b, c, h * w), (0, 2, 1))
    xn = x / jnp.maximum(jnp.linalg.norm(x, axis=-1, keepdims=True), EPS)
    yn = y / jnp.maximum(jnp.linalg.norm(y, axis=-1, keepdims=True), EPS)
    cos = jnp.sum(xn * yn, axis=-1)
    return jnp.mean(1.0 - cos)


if __name__ == "__main__":
    key = jax.random.PRNGKey(0)
    k_w, k_x, k_y = jax.random.split(key, 3)

    b, c, h, w = 2, 4, 16, 16
    inp = jax.random.normal(k_x, (b, c, h, w), dtype=jnp.float32)
    label = jax.random.normal(k_y, (b, c, h, w), dtype=jnp.float32)

    module = ArcMarginProduct(in_features=c, out_features=c, key=k_w)

    out = module(inp, label)
    out = jax.block_until_ready(out)

    ref = _reference(inp, label)
    assert jnp.allclose(out, ref, atol=1e-5, rtol=1e-5), (out, ref)
    print("KERNEL_OK")
</pallas_src>

<mosaic_0001>
module attributes {stable_mosaic.version = 11 : i64} {
  func.func @_arc_kernel(%arg0: i32, %arg1: i32, %arg2: memref<1x4x256xf32, #tpu.memory_space<vmem>>, %arg3: memref<1x4x256xf32, #tpu.memory_space<vmem>>, %arg4: memref<1x1x256xf32, #tpu.memory_space<vmem>>) attributes {dimension_semantics = [#tpu.dimension_semantics<parallel>, #tpu.dimension_semantics<arbitrary>], iteration_bounds = array<i64: 2, 1>, scalar_prefetch = 0 : i64, scratch_operands = 0 : i64, tpu.core_type = #tpu.core_type<tc>, window_params = [{transform_indices = @transform_0, window_bounds = array<i64: 1, 4, 256>}, {transform_indices = @transform_1, window_bounds = array<i64: 1, 4, 256>}, {transform_indices = @transform_2, window_bounds = array<i64: 1, 1, 256>}]} {
    %c0_i32 = arith.constant 0 : i32
    %0 = arith.cmpi eq, %arg1, %c0_i32 : i32
    %1 = arith.extui %0 : i1 to i32
    %c0_i32_0 = arith.constant 0 : i32
    %2 = arith.cmpi ne, %1, %c0_i32_0 : i32
    scf.if %2 {
      %cst_19 = arith.constant 0.000000e+00 : f32
      %35 = vector.broadcast %cst_19 : f32 to vector<1x1x256xf32>
      %c0_20 = arith.constant 0 : index
      %c0_21 = arith.constant 0 : index
      %c0_22 = arith.constant 0 : index
      %36 = vector.load %arg4[%c0_20, %c0_21, %c0_22] : memref<1x1x256xf32, #tpu.memory_space<vmem>>, vector<1x1x256xf32>
      tpu.vector_store %arg4[%c0_20, %c0_21, %c0_22], %35 {strides = array<i32>} : memref<1x1x256xf32, #tpu.memory_space<vmem>>, vector<1x1x256xf32>,
    } else {
    }
    %c0 = arith.constant 0 : index
    %c0_1 = arith.constant 0 : index
    %c0_2 = arith.constant 0 : index
    %3 = vector.load %arg2[%c0, %c0_1, %c0_2] : memref<1x4x256xf32, #tpu.memory_space<vmem>>, vector<1x4x256xf32>
    %c0_3 = arith.constant 0 : index
    %c0_4 = arith.constant 0 : index
    %c0_5 = arith.constant 0 : index
    %4 = vector.load %arg3[%c0_3, %c0_4, %c0_5] : memref<1x4x256xf32, #tpu.memory_space<vmem>>, vector<1x4x256xf32>
    %5 = arith.mulf %3, %4 : vector<1x4x256xf32>
    %cst = arith.constant dense<0.000000e+00> : vector<1x256xf32>
    %6 = vector.multi_reduction <add>, %5, %cst [1] : vector<1x4x256xf32> to vector<1x256xf32>
    %7 = vector.shape_cast %6 : vector<1x256xf32> to vector<1x1x256xf32>
    %8 = arith.mulf %3, %3 : vector<1x4x256xf32>
    %cst_6 = arith.constant dense<0.000000e+00> : vector<1x256xf32>
    %9 = vector.multi_reduction <add>, %8, %cst_6 [1] : vector<1x4x256xf32> to vector<1x256xf32>
    %10 = vector.shape_cast %9 : vector<1x256xf32> to vector<1x1x256xf32>
    %11 = arith.mulf %4, %4 : vector<1x4x256xf32>
    %cst_7 = arith.constant dense<0.000000e+00> : vector<1x256xf32>
    %12 = vector.multi_reduction <add>, %11, %cst_7 [1] : vector<1x4x256xf32> to vector<1x256xf32>
    %13 = vector.shape_cast %12 : vector<1x256xf32> to vector<1x1x256xf32>
    %cst_8 = arith.constant 1.000000e-24 : f32
    %14 = vector.broadcast %cst_8 : f32 to vector<1x1x256xf32>
    %15 = arith.maximumf %10, %14 : vector<1x1x256xf32>
    %16 = math.rsqrt %15 : vector<1x1x256xf32>
    %cst_9 = arith.constant 1.000000e-24 : f32
    %17 = vector.broadcast %cst_9 : f32 to vector<1x1x256xf32>
    %18 = arith.maximumf %13, %17 : vector<1x1x256xf32>
    %19 = math.rsqrt %18 : vector<1x1x256xf32>
    %20 = arith.mulf %16, %19 : vector<1x1x256xf32>
    %21 = arith.mulf %7, %20 : vector<1x1x256xf32>
    %c256_i32 = arith.constant 256 : i32
    %22 = arith.muli %arg1, %c256_i32 : i32
    %23 = tpu.iota {dimensions = array<i32: 2>} : vector<1x1x256xi32>
    %24 = vector.broadcast %22 : i32 to vector<1x1x256xi32>
    %25 = arith.addi %24, %23 : vector<1x1x256xi32>
    %c256_i32_10 = arith.constant 256 : i32
    %26 = vector.broadcast %c256_i32_10 : i32 to vector<1x1x256xi32>
    %27 = arith.cmpi slt, %25, %26 : vector<1x1x256xi32>
    %cst_11 = arith.constant 1.000000e+00 : f32
    %28 = vector.broadcast %cst_11 : f32 to vector<1x1x256xf32>
    %29 = arith.subf %28, %21 : vector<1x1x256xf32>
    %cst_12 = arith.constant 0.000000e+00 : f32
    %30 = vector.broadcast %cst_12 : f32 to vector<1x1x256xf32>
    %31 = arith.select %27, %29, %30 : vector<1x1x256xi1>, vector<1x1x256xf32>
    %c0_13 = arith.constant 0 : index
    %c0_14 = arith.constant 0 : index
    %c0_15 = arith.constant 0 : index
    %32 = vector.load %arg4[%c0_13, %c0_14, %c0_15] : memref<1x1x256xf32, #tpu.memory_space<vmem>>, vector<1x1x256xf32>
    %33 = arith.addf %32, %31 : vector<1x1x256xf32>
    %c0_16 = arith.constant 0 : index
    %c0_17 = arith.constant 0 : index
    %c0_18 = arith.constant 0 : index
    %34 = vector.load %arg4[%c0_16, %c0_17, %c0_18] : memref<1x1x256xf32, #tpu.memory_space<vmem>>, vector<1x1x256xf32>
    tpu.vector_store %arg4[%c0_16, %c0_17, %c0_18], %33 {strides = array<i32>} : memref<1x1x256xf32, #tpu.memory_space<vmem>>, vector<1x1x256xf32>,
    return
  }
  func.func @transform_0(%arg0: i32, %arg1: i32) -> (i32, i32, i32) {
    %c0_i32 = arith.constant 0 : i32
    %c0_i32_0 = arith.constant 0 : i32
    return %arg0, %c0_i32, %arg1 : i32, i32, i32
  }
  func.func @transform_1(%arg0: i32, %arg1: i32) -> (i32, i32, i32) {
    %c0_i32 = arith.constant 0 : i32
    %c0_i32_0 = arith.constant 0 : i32
    return %arg0, %c0_i32, %arg1 : i32, i32, i32
  }
  func.func @transform_2(%arg0: i32, %arg1: i32) -> (i32, i32, i32) {
    %c0_i32 = arith.constant 0 : i32
    %c0_i32_0 = arith.constant 0 : i32
    %c0_i32_1 = arith.constant 0 : i32
    return %arg0, %c0_i32, %c0_i32_0 : i32, i32, i32
  }
}

</mosaic_0001>

<bundles_post_ra>
// kernel: tpu_custom_call.1
= control target key start
LH: loop header
LB: loop body
LE: loop exit
PB: predicated region body
PF: predicated region fallthrough
CT: control target
= control target key end

     0   :  { %7 = vsyncpa [#allocation3], 0  ;;  %s911_s0 = inlined_call_operand.hbm [shape: f32[2,4,256], index: 0, kind: input, shape index: {}]   ;;  %s912_s1 = inlined_call_operand.hbm [shape: f32[2,4,256], index: 1, kind: input, shape index: {}]   ;;  %s913_s2 = inlined_call_operand.hbm [shape: f32[2,1,256], index: 2, kind: output, shape index: {}]  }
   0x1   :  { %9 = vsyncpa [#allocation3 + $0x1], 0 }
   0x2   :  { %10 = vsyncpa [#allocation6], 0 }
   0x3   :  { %12 = vsyncpa [#allocation6 + $0x1], 0 }
   0x4   :  { %13 = vsyncpa [#allocation4], 0 }
   0x5   :  { %15 = vsyncpa [#allocation4 + $0x1], 0  ;;  %s756_s9 = smov 0   ;;  %s758_s10 = smov 0  }
   0x6   :  { %s760_s11 = smov 0   ;;  %s762_s12 = smov 0  }
   0x7   :  { %s764_s13 = smov 0   ;;  %s766_s14 = smov 0  }
   0x8 LB: > { %s496_s15 = sadd.s32 4294967295, %s738_s14   ;;  %s497_s16 = sadd.s32 4294967294, %s738_s14   ;;  %s738_s14 = sphi %s766_s14, %s21_s14   ;;  %s734_s13 = sphi %s764_s13, %s926_s13   ;;  %s730_s12 = sphi %s762_s12, %s925_s12   ;;  %s726_s11 = sphi %s760_s11, %s924_s11   ;;  %s722_s10 = sphi %s758_s10, %s923_s10   ;;  %s718_s9 = sphi %s756_s9, %s922_s9  }
   0x9   : > { %s33_s17 = sadd.s32 1, %s734_s13  ;;  %s42_s18 = sadd.s32 1, %s726_s11 }
   0xa   : > { %p35_p0 = scmp.ge.s32.totalorder %s33_s17, 2  ;;  %p49_p1 = scmp.ne.s32.totalorder %s726_s11, %s722_s10 }
   0xb   : > { %p50_p2 = scmp.eq.s32.totalorder %s738_s14, 0  ;;  %p55_p3 = scmp.ne.s32.totalorder %s722_s10, %s718_s9 }
   0xc   : > { %s928_s17 = smov (%p35_p0, %s33_s17), 0  ;;  %p56_p5 = scmp.eq.s32.totalorder %s496_s15, 0 }
   0xd   : > { %p797_p4 = por %p50_p2, %p49_p1  ;;  %s37_s20 = ssub.s32 %s734_s13, %s928_s17 }
   0xe   : > { %p107_p6 = scmp.eq.s32.totalorder %s496_s15, 1  ;;  %p40_p7 = scmp.eq.s32.totalorder %s37_s20, 0 }
   0xf   : > { %p803_p8 = por %p56_p5, %p55_p3  ;;  %p113_p10 = scmp.eq.s32.totalorder %s497_s16, 1 }
  0x10   : > { %p807_p9 = por %p107_p6, %p49_p1  ;;  %p499_p12 = scmp.ge.s32.totalorder %s738_s14, 2 }
  0x11   : > { %s812_s23 = scalar_select %p40_p7, %s726_s11, %s42_s18  }
  0x12   : > { %p814_p11 = por %p113_p10, %p55_p3  ;;  %p533_p13 = scmp.lt.s32.totalorder %s738_s14, 2 }
  0x13   : > { %s133_s25 = sand.u32 1, %s726_s11   ;;  %s514_s27 = sshll.u32 %s734_s13, 3 }
  0x14   : > { %s500_s26 = sshll.u32 %s133_s25, 3  ;;  %s144_s30 = scalar_lea.hbm %s911_s0, %s514_s27 }
  0x15   : > { %s137_s3 = scalar_lea.vmem [#allocation2], %s500_s26  ;;  %s146_s5 = sshll.u32 %s144_s30, 4  ;;  %s147_s5 = int_to_ptr.hbm [resolvable:$true] %s146_s5 }
  0x16   : > { %s148_s4 = sshll.u32 %s137_s3, 4  ;;  %p523_p0 = pnand %p533_p13, %p797_p4  ;;  %s149_s4 = int_to_ptr.vmem [resolvable:$true] %s148_s4 }
  0x17   : > { %p506_p1 = scmp.ge.s32.totalorder %s738_s14, 1  ;;  %p175_p2 = scmp.lt.s32.totalorder %s738_s14, 3 }
  0x18   : > { %s134_s6 = scalar_lea.sflag [#allocation3], %s133_s25  ;;  %s166_s15 = scalar_lea.hbm %s912_s1, %s514_s27 }
  0x19   : > { %525 = dma.hbm_to_vmem [thread:$0]  (!%p523_p0), %s147_s5, 128, %s149_s4, %s134_s6  }
  0x1a   : > { %p176_p3 = pnand %p506_p1, %p175_p2  ;;  %s159_s16 = scalar_lea.vmem [#allocation5], %s500_s26 }
  0x1b   : > { %s170_s18 = sshll.u32 %s159_s16, 4  ;;  %s168_s20 = sshll.u32 %s166_s15, 4  ;;  %s171_s18 = int_to_ptr.vmem [resolvable:$true] %s170_s18  ;;  %s169_s20 = int_to_ptr.hbm [resolvable:$true] %s168_s20 }
  0x1c   : > { %s156_s28 = scalar_lea.sflag [#allocation6], %s133_s25  ;;  %179 = sbr.rel (%p176_p3) target bundleno = 111 (0x6f), region = 28 }
  0x1d   : > { %528 = dma.hbm_to_vmem [thread:$0]  (!%p523_p0), %s169_s20, 128, %s171_s18, %s156_s28  }
  0x1e   : > { %s833_s19 = sand.u32 (!%p176_p3), 1, %s722_s10  }
  0x1f   : > { %s507_s29 = sshll.u32 (!%p176_p3), %s833_s19, 3  ;;  %s182_s30 = scalar_lea.sflag (!%p176_p3), [#allocation3], %s833_s19 }
  0x20   : > { %s185_s3 = scalar_lea.vmem (!%p176_p3), [#allocation2], %s507_s29 }
  0x21   : > { %705 = dma.done.wait (%p803_p8), %s182_s30, 128  }
  0x22   : > { %707 = vsyncadd (%p803_p8), %s182_s30, 4294967168  ;;  %s192_s26 = scalar_lea.sflag [#allocation6], %s833_s19  ;;  %s195_s25 = scalar_lea.vmem [#allocation5], %s507_s29 }
  0x23   : > { %709 = dma.done.wait (%p803_p8), %s192_s26, 128  }
  0x24   : > { %711 = vsyncadd (%p803_p8), %s192_s26, 4294967168  ;;  %v233_v0 = vld [vmem:[%s185_s3] sm:$0xff]  ;;  %v234_v1 = vld [vmem:[%s195_s25] sm:$0xff]  ;;  %s509_s27 = sshll.u32 %s833_s19, 1  ;;  %v228_v6 = vlaneseq  ;;  %v740_v9 = vmov 0.0   ;;  %vm242_vm1 = vcmask 1043456  }
  0x25   : > { %v235_v2 = vmul.f32 %v234_v1, %v233_v0  ;;  %v257_v3 = vmul.f32 %v233_v0, %v233_v0  ;;  %v278_v8 = vmul.f32 %v234_v1, %v234_v1  ;;  %s851_s4 = scalar_lea.vmem [#allocation7], %s509_s27  ;;  %s511_s21 = sshll.u32 %s730_s12, 1  ;;  %vm364_vm14 = vcmask 1040384  }
  0x26   : > { %vm847_vm0 = vcmp.lt.s32.totalorder %v228_v6, 256  ;;  %s384_s7 = scalar_lea.hbm %s913_s2, %s511_s21  ;;  %s386_s8 = sshll.u32 %s851_s4, 4  ;;  %s387_s8 = int_to_ptr.vmem [resolvable:$true] %s386_s8 }
  0x27   : > { %237 = vst [vmem:[#allocation1] ss:$2 sm:$0xff] %v235_v2  ;;  %s388_s15 = sshll.u32 %s384_s7, 4  ;;  %s374_s12 = scalar_lea.sflag [#allocation4], %s833_s19  ;;  %s389_s15 = int_to_ptr.hbm [resolvable:$true] %s388_s15 }
  0x28   : > { %232 = vst.msk [vmem:[%s851_s4] sm:$0x3] %vm847_vm0, %v740_v9  ;;  %s666_s16 = sshra.s32 %s389_s15, 4  ;;  %s672_s29 = scalar_lea.hbm %s913_s2, 4  ;;  %s667_s16 = int_to_ptr.hbm [resolvable:$true] %s666_s16 }
  0x29   : > { %s668_s18 = scalar_lea.hbm %s667_s16, 2  ;;  %p673_p7 = scmp.lt.s32.totalorder %s667_s16, %s913_s2 }
  0x2a   : > { %p669_p4 = scmp.ne.s32.totalorder %s667_s16, %s668_s18  ;;  %p674_p8 = scmp.lt.s32.totalorder %s672_s29, %s668_s18 }
  0x2c   : > { %p670_p5 = pnand %p669_p4, %p807_p9  ;;  %p675_p10 = por %p674_p8, %p673_p7 }
  0x2e   : > { %v238_v4 = vld.sshfl [vmem:[#allocation1] sm:$0xff pattern:$0x75316420]  ;;  %v239_v5 = vld.sshfl [vmem:[#allocation1 + $0x8] sm:$0xff pattern:$0x75316420]  ;;  %p671_p6 = pneg %p670_p5 }
  0x2f   : > { %259 = vst [vmem:[#allocation1] ss:$2 sm:$0xff] %v257_v3  ;;  %v243_v42 = vsel %vm242_vm1, %v238_v4, 0.0  ;;  %v250_v43 = vsel %vm242_vm1, %v239_v5, 0.0 }
  0x30   : > { %v244_v50 = vrot.slane %v243_v42, 4  ;;  %v251_v51 = vrot.slane %v250_v43, 4  ;;  %p676_p13 = pnand %p675_p10, %p671_p6 }
  0x32   : > { %v245_v56 = vadd.f32 %v244_v50, %v243_v42  ;;  %v252_v57 = vadd.f32 %v251_v51, %v250_v43 }
  0x34   : > { %v246_v62 = vrot.slane %v245_v56, 2  ;;  %v253_v63 = vrot.slane %v252_v57, 2 }
  0x36   : > { %v260_v10 = vld.sshfl [vmem:[#allocation1] sm:$0xff pattern:$0x75316420]  ;;  %v261_v11 = vld.sshfl [vmem:[#allocation1 + $0x8] sm:$0xff pattern:$0x75316420]  ;;  %v247_v6 = vadd.f32 %v246_v62, %v245_v56 }
  0x37   : > { %v264_v12 = vsel %vm242_vm1, %v260_v10, 0.0  ;;  %v271_v13 = vsel %vm242_vm1, %v261_v11, 0.0  ;;  %280 = vst [vmem:[#allocation1] ss:$2 sm:$0xff] %v278_v8  ;;  %v254_v8 = vadd.f32 %v253_v63, %v252_v57 }
  0x38   : > { %v265_v14 = vrot.slane %v264_v12, 4  ;;  %v272_v15 = vrot.slane %v271_v13, 4 }
  0x3a   : > { %v266_v16 = vadd.f32 %v265_v14, %v264_v12  ;;  %v273_v17 = vadd.f32 %v272_v15, %v271_v13 }
  0x3c   : > { %v267_v18 = vrot.slane %v266_v16, 2  ;;  %v274_v19 = vrot.slane %v273_v17, 2 }
  0x3e   : > { %v268_v20 = vadd.f32 %v267_v18, %v266_v16  ;;  %v275_v21 = vadd.f32 %v274_v19, %v273_v17  ;;  %v281_v22 = vld.sshfl [vmem:[#allocation1] sm:$0xff pattern:$0x75316420]  ;;  %v282_v23 = vld.sshfl [vmem:[#allocation1 + $0x8] sm:$0xff pattern:$0x75316420] }
  0x3f   : > { %v285_v24 = vsel %vm242_vm1, %v281_v22, 0.0  ;;  %v292_v25 = vsel %vm242_vm1, %v282_v23, 0.0  ;;  %v248_v16 = vrot.slane %v247_v6, 1  ;;  %v255_v17 = vrot.slane %v254_v8, 1 }
  0x40   : > { %v269_v26 = vrot.slane %v268_v20, 1  ;;  %v276_v27 = vrot.slane %v275_v21, 1  ;;  %v286_v28 = vrot.slane %v285_v24, 4  ;;  %v293_v29 = vrot.slane %v292_v25, 4 }
  0x42   : > { %v270_v30 = vadd.f32 %v269_v26, %v268_v20  ;;  %v277_v31 = vadd.f32 %v276_v27, %v275_v21  ;;  %v287_v32 = vadd.f32 %v286_v28, %v285_v24  ;;  %v294_v33 = vadd.f32 %v293_v29, %v292_v25 }
  0x43   : > { %v249_v25 = vadd.f32 %v248_v16, %v247_v6  ;;  %v256_v26 = vadd.f32 %v255_v17, %v254_v8 }
  0x44   : > { %v299_v34 = vmax.f32 %v270_v30, 1e-24  ;;  %v300_v35 = vmax.f32 %v277_v31, 1e-24  ;;  %v288_v36 = vrot.slane %v287_v32, 2  ;;  %v295_v37 = vrot.slane %v294_v33, 2 }
  0x46   : > { %584 = vrsqrt.f32 %v299_v34  ;;  %v289_v38 = vadd.f32 %v288_v36, %v287_v32  ;;  %v296_v39 = vadd.f32 %v295_v37, %v294_v33  ;;  %vm307_vm4 = vweird.f32 %v299_v34  ;;  %v360_v32 = vld [vmem:[%s851_s4] sm:$0x3] }
  0x47   : > { %586 = vrsqrt.f32 %v300_v35  ;;  %vm317_vm7 = vweird.f32 %v300_v35 }
  0x48   : > { %v290_v40 = vrot.slane %v289_v38, 1  ;;  %v297_v41 = vrot.slane %v296_v39, 1 }
  0x4a   : > { %v291_v44 = vadd.f32 %v290_v40, %v289_v38  ;;  %v298_v45 = vadd.f32 %v297_v41, %v296_v39 }
  0x4c   : > { %v585_v46 = vpop.eup %584  ;;  %v321_v47 = vmax.f32 %v291_v44, 1e-24  ;;  %v322_v48 = vmax.f32 %v298_v45, 1e-24 }
  0x4d   : > { %v587_v49 = vpop.eup %586  ;;  %v302_v52 = vmul.f32 %v585_v46, %v299_v34  ;;  %vm308_vm2 = vweird.f32 %v585_v46 }
  0x4e   : > { %v312_v53 = vmul.f32 %v587_v49, %v300_v35  ;;  %588 = vrsqrt.f32 %v321_v47  ;;  %vm318_vm3 = vweird.f32 %v587_v49  ;;  %vm862_vm6 = vmor %vm307_vm4, %vm308_vm2  ;;  %vm329_vm10 = vweird.f32 %v321_v47 }
  0x4f   : > { %v303_v54 = vmul.f32 %v585_v46, %v302_v52  ;;  %590 = vrsqrt.f32 %v322_v48  ;;  %vm319_vm9 = vmor %vm317_vm7, %vm318_vm3  ;;  %vm339_vm12 = vweird.f32 %v322_v48 }
  0x50   : > { %v313_v55 = vmul.f32 %v587_v49, %v312_v53 }
  0x51   : > { %v304_v58 = vmul.f32 0.5, %v303_v54 }
  0x52   : > { %v314_v60 = vmul.f32 0.5, %v313_v55 }
  0x53   : > { %v305_v2 = vsub.f32 1.5, %v304_v58 }
  0x54   : > { %v589_v59 = vpop.eup %588  ;;  %v315_v4 = vsub.f32 1.5, %v314_v60 }
  0x55   : > { %v591_v61 = vpop.eup %590  ;;  %v324_v0 = vmul.f32 %v589_v59, %v321_v47  ;;  %v306_v11 = vmul.f32 %v585_v46, %v305_v2  ;;  %vm330_vm5 = vweird.f32 %v589_v59 }
  0x56   : > { %v334_v1 = vmul.f32 %v591_v61, %v322_v48  ;;  %v316_v14 = vmul.f32 %v587_v49, %v315_v4  ;;  %vm340_vm8 = vweird.f32 %v591_v61  ;;  %vm331_vm11 = vmor %vm329_vm10, %vm330_vm5 }
  0x57   : > { %v325_v3 = vmul.f32 %v589_v59, %v324_v0  ;;  %v310_v20 = vsel %vm862_vm6, %v585_v46, %v306_v11  ;;  %vm341_vm13 = vmor %vm339_vm12, %vm340_vm8 }
  0x58   : > { %v335_v5 = vmul.f32 %v591_v61, %v334_v1  ;;  %v320_v22 = vsel %vm319_vm9, %v587_v49, %v316_v14 }
  0x59   : > { %v326_v9 = vmul.f32 0.5, %v325_v3 }
  0x5a   : > { %v336_v10 = vmul.f32 0.5, %v335_v5 }
  0x5b   : > { %v327_v12 = vsub.f32 1.5, %v326_v9 }
  0x5c   : > { %v337_v15 = vsub.f32 1.5, %v336_v10 }
  0x5d   : > { %v328_v18 = vmul.f32 %v589_v59, %v327_v12 }
  0x5e   : > { %v338_v19 = vmul.f32 %v591_v61, %v337_v15 }
  0x5f   : > { %v332_v21 = vsel %vm331_vm11, %v589_v59, %v328_v18 }
  0x60   : > { %v342_v23 = vsel %vm341_vm13, %v591_v61, %v338_v19  ;;  %v343_v24 = vmul.f32 %v332_v21, %v310_v20 }
  0x61   : > { %v344_v27 = vmul.f32 %v342_v23, %v320_v22 }
  0x62   : > { %v345_v28 = vmul.f32 %v343_v24, %v249_v25 }
  0x63   : > { %v346_v29 = vmul.f32 %v344_v27, %v256_v26 }
  0x64   : > { %v356_v31 = vsub.f32 1.0, %v345_v28 }
  0x65   : > { %v357_v30 = vsub.f32 1.0, %v346_v29 }
  0x67   : > { %v363_v33 = vrot.slane %v357_v30, 7 }
  0x69   : > { %v365_v34 = vsel %vm364_vm14, %v356_v31, %v363_v33 }
  0x6a   : > { %v367_v35 = vadd.f32 %v365_v34, %v360_v32 }
  0x6c   : > { %372 = vst.msk [vmem:[%s851_s4] sm:$0x3] %vm847_vm0, %v367_v35 }
  0x6d   : > { %679 = shalt.err (!%p676_p13)
}
  0x6e   : > { %520 = dma.vmem_to_hbm [thread:$0]  (%p807_p9), %s387_s8, 32, %s389_s15, %s374_s12  }
  0x6f PF: > { %s400_s19 = sand.u32 1, %s718_s9   ;;  %p530_p0 = pnand %p499_p12, %p814_p11 }
  0x70   : > { %s401_s26 = scalar_lea.sflag [#allocation4], %s400_s19 }
  0x71   : > { %p531_p1 = pneg %p530_p0 }
  0x73   : > { %713 = dma.done.wait (%p531_p1), %s401_s26, 32  }
  0x74   : > { %715 = vsyncadd (%p531_p1), %s401_s26, 4294967264  ;;  %s21_s14 = sadd.s32 1, %s738_s14   ;;  %s922_s9 = smov %s722_s10 }
  0x75   : > { %p18_p2 = scmp.ge.s32.totalorder %s21_s14, 4   ;;  %s923_s10 = smov %s726_s11 }
  0x76   : > { %s924_s11 = smov %s812_s23  ;;  %s925_s12 = smov %s734_s13 }
  0x77   : > { %s926_s13 = smov %s928_s17  ;;  %20 = sbr.rel (!%p18_p2) target bundleno = 8 (0x8), region = 90 }
  0x7c   :  { %407 = vsyncpa [#allocation3], 1 }
  0x7d   :  { %409 = vsyncpa [#allocation3 + $0x1], 1 }
  0x7e   :  { %410 = vsyncpa [#allocation6], 1 }
  0x7f   :  { %412 = vsyncpa [#allocation6 + $0x1], 1 }
  0x80   :  { %413 = vsyncpa [#allocation4], 1 }
  0x81   :  { %415 = vsyncpa [#allocation4 + $0x1], 1 }

</bundles_post_ra>
